<compile_context>
chip_gen: v5e
topology: v5e:2x2
jax: 0.10.0
libtpu: 0.0.40
codegen_flags: <defaults>
</compile_context>

<pallas_src>
import jax
import jax.numpy as jnp
from jax.experimental import pallas as pl
from jax.experimental.pallas import tpu as pltpu

_LANE = 128


def _add_kernel(a_ref, b_ref, o_ref):
    # Single full-tile elementwise add on the VPU.
    o_ref[...] = a_ref[...] + b_ref[...]


def pallas_add(x268, x253):
    assert x268.shape == x253.shape and x268.dtype == x253.dtype
    orig_shape = x268.shape
    total = x268.size

    # Lane-dense 2D view: last axis a multiple of 128 when possible.
    if total % _LANE == 0:
        flat_shape = (total // _LANE, _LANE)
    else:
        # Fallback: single-row slab; full-extent blocks are exempt from the
        # (8,128) divisibility rule, though stores may be partially masked.
        flat_shape = (1, total)

    a2d = x268.reshape(flat_shape)
    b2d = x253.reshape(flat_shape)

    out2d = pl.pallas_call(
        _add_kernel,
        out_shape=jax.ShapeDtypeStruct(flat_shape, x268.dtype),
        # No grid: whole arrays as single VMEM-resident blocks.
        in_specs=[
            pl.BlockSpec(memory_space=pltpu.MemorySpace.VMEM),
            pl.BlockSpec(memory_space=pltpu.MemorySpace.VMEM),
        ],
        out_specs=pl.BlockSpec(memory_space=pltpu.MemorySpace.VMEM),
    )(a2d, b2d)

    return out2d.reshape(orig_shape)


if __name__ == "__main__":
    key = jax.random.PRNGKey(0)
    k1, k2 = jax.random.split(key)
    # Shapes from the module's forward: [1, 160, 14, 14]
    x268 = jax.random.normal(k1, (1, 160, 14, 14), dtype=jnp.float32)
    x253 = jax.random.normal(k2, (1, 160, 14, 14), dtype=jnp.float32)

    out = pallas_add(x268, x253)
    out = jax.block_until_ready(out)

    ref = x268 + x253
    assert out.shape == (1, 160, 14, 14)
    assert jnp.allclose(out, ref, atol=1e-6, rtol=1e-6)
    print("KERNEL_OK")
</pallas_src>

<mosaic_0001>
module attributes {stable_mosaic.version = 11 : i64} {
  func.func @_add_kernel(%arg0: memref<245x128xf32, #tpu.memory_space<vmem>>, %arg1: memref<245x128xf32, #tpu.memory_space<vmem>>, %arg2: memref<245x128xf32, #tpu.memory_space<vmem>>) attributes {dimension_semantics = [], scalar_prefetch = 0 : i64, scratch_operands = 0 : i64, tpu.core_type = #tpu.core_type<tc>} {
    %c0 = arith.constant 0 : index
    %c0_0 = arith.constant 0 : index
    %0 = vector.load %arg0[%c0, %c0_0] : memref<245x128xf32, #tpu.memory_space<vmem>>, vector<245x128xf32>
    %c0_1 = arith.constant 0 : index
    %c0_2 = arith.constant 0 : index
    %1 = vector.load %arg1[%c0_1, %c0_2] : memref<245x128xf32, #tpu.memory_space<vmem>>, vector<245x128xf32>
    %2 = arith.addf %0, %1 : vector<245x128xf32>
    %c0_3 = arith.constant 0 : index
    %c0_4 = arith.constant 0 : index
    %3 = vector.load %arg2[%c0_3, %c0_4] : memref<245x128xf32, #tpu.memory_space<vmem>>, vector<245x128xf32>
    tpu.vector_store %arg2[%c0_3, %c0_4], %2 {strides = array<i32>} : memref<245x128xf32, #tpu.memory_space<vmem>>, vector<245x128xf32>,
    return
  }
}

</mosaic_0001>

<bundles_post_ra>
// kernel: tpu_custom_call.1
= control target key start
LH: loop header
LB: loop body
LE: loop exit
PB: predicated region body
PF: predicated region fallthrough
CT: control target
= control target key end

     0   :  { %7 = vsyncpa [#allocation3], 0  ;;  %s309_s0 = inlined_call_operand.hbm [shape: f32[245,128], index: 0, kind: input, shape index: {}]   ;;  %s310_s1 = inlined_call_operand.hbm [shape: f32[245,128], index: 1, kind: input, shape index: {}]   ;;  %s311_s2 = inlined_call_operand.hbm [shape: f32[245,128], index: 2, kind: output, shape index: {}]  }
   0x1   :  { %8 = vsyncpa [#allocation6], 0 }
   0x2   :  { %9 = vsyncpa [#allocation4], 0  ;;  %s14_s11 = sshll.u32 %s309_s0, 4  ;;  %s271_s12 = smov [#allocation2]   ;;  %s15_s11 = int_to_ptr.hbm [resolvable:$true] %s14_s11 }
   0x3   :  { %s16_s13 = sshll.u32 %s271_s12, 4  ;;  %s27_s16 = sshll.u32 %s310_s1, 4  ;;  %s17_s13 = int_to_ptr.vmem [resolvable:$true] %s16_s13  ;;  %s28_s16 = int_to_ptr.hbm [resolvable:$true] %s27_s16 }
   0x4   :  { %s272_s17 = smov 128   ;;  %s273_s18 = smov 8  }
   0x5   :  { %22 = dma.hbm_to_vmem [thread:$0]  %s15_s11, 3968, %s17_s13, [#allocation3], %s272_s17, %s272_s17, %s273_s18  }
   0x6   :  { %s274_s19 = smov [#allocation5]  }
   0x7   :  { %s29_s20 = sshll.u32 %s274_s19, 4  ;;  %s30_s20 = int_to_ptr.vmem [resolvable:$true] %s29_s20 }
   0x8   :  { %35 = dma.hbm_to_vmem [thread:$0]  %s28_s16, 3968, %s30_s20, [#allocation6], %s272_s17, %s272_s17, %s273_s18  }
   0x9   :  { %265 = dma.done.wait [#allocation3], 3968  }
   0xa   :  { %266 = vsyncadd [#allocation3], 4294963328 }
   0xb   :  { %267 = dma.done.wait [#allocation6], 3968  }
   0xc   :  { %268 = vsyncadd [#allocation6], 4294963328  ;;  %v44_v0 = vld [vmem:[#allocation2] sm:$0xff]  ;;  %v75_v1 = vld [vmem:[#allocation5] sm:$0xff]  ;;  %s275_s0 = smov [#allocation7]   ;;  %s174_s23 = sshll.u32 %s311_s2, 4  ;;  %s175_s23 = int_to_ptr.hbm [resolvable:$true] %s174_s23 }
   0xd   :  { %v45_v2 = vld [vmem:[#allocation2 + $0x8] sm:$0xff]  ;;  %v106_v3 = vadd.f32 %v75_v1, %v44_v0  ;;  %v76_v4 = vld [vmem:[#allocation5 + $0x8] sm:$0xff]  ;;  %v46_v5 = vld [vmem:[#allocation2 + $0x10] sm:$0xff]  ;;  %s172_s1 = sshll.u32 %s275_s0, 4  ;;  %s173_s1 = int_to_ptr.vmem [resolvable:$true] %s172_s1 }
   0xe   :  { %v77_v6 = vld [vmem:[#allocation5 + $0x10] sm:$0xff]  ;;  %v107_v7 = vadd.f32 %v76_v4, %v45_v2  ;;  %v47_v9 = vld [vmem:[#allocation2 + $0x18] sm:$0xff]  ;;  %v78_v10 = vld [vmem:[#allocation5 + $0x18] sm:$0xff] }
   0xf   :  { %v108_v8 = vadd.f32 %v77_v6, %v46_v5  ;;  %v48_v11 = vld [vmem:[#allocation2 + $0x20] sm:$0xff]  ;;  %137 = vst [vmem:[#allocation7] sm:$0xff] %v106_v3  ;;  %v109_v12 = vadd.f32 %v78_v10, %v47_v9  ;;  %v79_v13 = vld [vmem:[#allocation5 + $0x20] sm:$0xff]  ;;  %v49_v14 = vld [vmem:[#allocation2 + $0x28] sm:$0xff] }
  0x10   :  { %v80_v15 = vld [vmem:[#allocation5 + $0x28] sm:$0xff]  ;;  %138 = vst [vmem:[#allocation7 + $0x8] sm:$0xff] %v107_v7  ;;  %v110_v16 = vadd.f32 %v79_v13, %v48_v11  ;;  %v50_v18 = vld [vmem:[#allocation2 + $0x30] sm:$0xff]  ;;  %v81_v19 = vld [vmem:[#allocation5 + $0x30] sm:$0xff] }
  0x11   :  { %v111_v17 = vadd.f32 %v80_v15, %v49_v14  ;;  %v51_v20 = vld [vmem:[#allocation2 + $0x38] sm:$0xff]  ;;  %139 = vst [vmem:[#allocation7 + $0x10] sm:$0xff] %v108_v8  ;;  %v112_v21 = vadd.f32 %v81_v19, %v50_v18  ;;  %v82_v22 = vld [vmem:[#allocation5 + $0x38] sm:$0xff]  ;;  %v52_v23 = vld [vmem:[#allocation2 + $0x40] sm:$0xff] }
  0x12   :  { %v83_v24 = vld [vmem:[#allocation5 + $0x40] sm:$0xff]  ;;  %140 = vst [vmem:[#allocation7 + $0x18] sm:$0xff] %v109_v12  ;;  %v113_v25 = vadd.f32 %v82_v22, %v51_v20  ;;  %v53_v26 = vld [vmem:[#allocation2 + $0x48] sm:$0xff]  ;;  %v84_v27 = vld [vmem:[#allocation5 + $0x48] sm:$0xff] }
  0x13   :  { %v54_v28 = vld [vmem:[#allocation2 + $0x50] sm:$0xff]  ;;  %141 = vst [vmem:[#allocation7 + $0x20] sm:$0xff] %v110_v16  ;;  %v114_v29 = vadd.f32 %v83_v24, %v52_v23  ;;  %v85_v30 = vld [vmem:[#allocation5 + $0x50] sm:$0xff]  ;;  %v55_v31 = vld [vmem:[#allocation2 + $0x58] sm:$0xff]  ;;  %v115_v33 = vadd.f32 %v84_v27, %v53_v26 }
  0x14   :  { %v86_v32 = vld [vmem:[#allocation5 + $0x58] sm:$0xff]  ;;  %142 = vst [vmem:[#allocation7 + $0x28] sm:$0xff] %v111_v17  ;;  %v56_v34 = vld [vmem:[#allocation2 + $0x60] sm:$0xff]  ;;  %v87_v35 = vld [vmem:[#allocation5 + $0x60] sm:$0xff]  ;;  %v116_v36 = vadd.f32 %v85_v30, %v54_v28 }
  0x15   :  { %143 = vst [vmem:[#allocation7 + $0x30] sm:$0xff] %v112_v21  ;;  %v57_v37 = vld [vmem:[#allocation2 + $0x68] sm:$0xff]  ;;  %v88_v38 = vld [vmem:[#allocation5 + $0x68] sm:$0xff]  ;;  %v117_v39 = vadd.f32 %v86_v32, %v55_v31  ;;  %v58_v40 = vld [vmem:[#allocation2 + $0x70] sm:$0xff]  ;;  %v118_v42 = vadd.f32 %v87_v35, %v56_v34 }
  0x16   :  { %144 = vst [vmem:[#allocation7 + $0x38] sm:$0xff] %v113_v25  ;;  %v89_v41 = vld [vmem:[#allocation5 + $0x70] sm:$0xff]  ;;  %v59_v43 = vld [vmem:[#allocation2 + $0x78] sm:$0xff]  ;;  %v90_v44 = vld [vmem:[#allocation5 + $0x78] sm:$0xff]  ;;  %v119_v45 = vadd.f32 %v88_v38, %v57_v37 }
  0x17   :  { %145 = vst [vmem:[#allocation7 + $0x40] sm:$0xff] %v114_v29  ;;  %v60_v46 = vld [vmem:[#allocation2 + $0x80] sm:$0xff]  ;;  %v91_v47 = vld [vmem:[#allocation5 + $0x80] sm:$0xff]  ;;  %v120_v48 = vadd.f32 %v89_v41, %v58_v40  ;;  %v61_v49 = vld [vmem:[#allocation2 + $0x88] sm:$0xff]  ;;  %v121_v51 = vadd.f32 %v90_v44, %v59_v43 }
  0x18   :  { %146 = vst [vmem:[#allocation7 + $0x48] sm:$0xff] %v115_v33  ;;  %v92_v50 = vld [vmem:[#allocation5 + $0x88] sm:$0xff]  ;;  %v62_v52 = vld [vmem:[#allocation2 + $0x90] sm:$0xff]  ;;  %v93_v53 = vld [vmem:[#allocation5 + $0x90] sm:$0xff]  ;;  %v122_v54 = vadd.f32 %v91_v47, %v60_v46 }
  0x19   :  { %147 = vst [vmem:[#allocation7 + $0x50] sm:$0xff] %v116_v36  ;;  %v63_v55 = vld [vmem:[#allocation2 + $0x98] sm:$0xff]  ;;  %v94_v56 = vld [vmem:[#allocation5 + $0x98] sm:$0xff]  ;;  %v123_v57 = vadd.f32 %v92_v50, %v61_v49  ;;  %v64_v58 = vld [vmem:[#allocation2 + $0xa0] sm:$0xff]  ;;  %v124_v60 = vadd.f32 %v93_v53, %v62_v52 }
  0x1a   :  { %148 = vst [vmem:[#allocation7 + $0x58] sm:$0xff] %v117_v39  ;;  %v95_v59 = vld [vmem:[#allocation5 + $0xa0] sm:$0xff]  ;;  %v65_v61 = vld [vmem:[#allocation2 + $0xa8] sm:$0xff]  ;;  %v96_v62 = vld [vmem:[#allocation5 + $0xa8] sm:$0xff]  ;;  %v125_v63 = vadd.f32 %v94_v56, %v63_v55 }
  0x1b   :  { %149 = vst [vmem:[#allocation7 + $0x60] sm:$0xff] %v118_v42  ;;  %v66_v0 = vld [vmem:[#allocation2 + $0xb0] sm:$0xff]  ;;  %v97_v1 = vld [vmem:[#allocation5 + $0xb0] sm:$0xff]  ;;  %v126_v2 = vadd.f32 %v95_v59, %v64_v58  ;;  %v67_v3 = vld [vmem:[#allocation2 + $0xb8] sm:$0xff]  ;;  %v127_v5 = vadd.f32 %v96_v62, %v65_v61 }
  0x1c   :  { %150 = vst [vmem:[#allocation7 + $0x68] sm:$0xff] %v119_v45  ;;  %v98_v4 = vld [vmem:[#allocation5 + $0xb8] sm:$0xff]  ;;  %v68_v6 = vld [vmem:[#allocation2 + $0xc0] sm:$0xff]  ;;  %v99_v7 = vld [vmem:[#allocation5 + $0xc0] sm:$0xff]  ;;  %v128_v8 = vadd.f32 %v97_v1, %v66_v0 }
  0x1d   :  { %151 = vst [vmem:[#allocation7 + $0x70] sm:$0xff] %v120_v48  ;;  %v69_v9 = vld [vmem:[#allocation2 + $0xc8] sm:$0xff]  ;;  %v100_v10 = vld [vmem:[#allocation5 + $0xc8] sm:$0xff]  ;;  %v129_v11 = vadd.f32 %v98_v4, %v67_v3  ;;  %v70_v12 = vld [vmem:[#allocation2 + $0xd0] sm:$0xff]  ;;  %v130_v14 = vadd.f32 %v99_v7, %v68_v6 }
  0x1e   :  { %152 = vst [vmem:[#allocation7 + $0x78] sm:$0xff] %v121_v51  ;;  %v101_v13 = vld [vmem:[#allocation5 + $0xd0] sm:$0xff]  ;;  %v71_v15 = vld [vmem:[#allocation2 + $0xd8] sm:$0xff]  ;;  %v102_v16 = vld [vmem:[#allocation5 + $0xd8] sm:$0xff]  ;;  %v131_v17 = vadd.f32 %v100_v10, %v69_v9 }
  0x1f   :  { %153 = vst [vmem:[#allocation7 + $0x80] sm:$0xff] %v122_v54  ;;  %v72_v18 = vld [vmem:[#allocation2 + $0xe0] sm:$0xff]  ;;  %v103_v19 = vld [vmem:[#allocation5 + $0xe0] sm:$0xff]  ;;  %v132_v20 = vadd.f32 %v101_v13, %v70_v12  ;;  %v73_v21 = vld [vmem:[#allocation2 + $0xe8] sm:$0xff]  ;;  %v133_v23 = vadd.f32 %v102_v16, %v71_v15 }
  0x20   :  { %154 = vst [vmem:[#allocation7 + $0x88] sm:$0xff] %v123_v57  ;;  %v104_v22 = vld [vmem:[#allocation5 + $0xe8] sm:$0xff]  ;;  %v74_v24 = vld [vmem:[#allocation2 + $0xf0] sm:$0x1f]  ;;  %v105_v25 = vld [vmem:[#allocation5 + $0xf0] sm:$0x1f]  ;;  %v134_v26 = vadd.f32 %v103_v19, %v72_v18 }
  0x21   :  { %155 = vst [vmem:[#allocation7 + $0x90] sm:$0xff] %v124_v60  ;;  %v135_v27 = vadd.f32 %v104_v22, %v73_v21  ;;  %v136_v28 = vadd.f32 %v105_v25, %v74_v24 }
  0x22   :  { %156 = vst [vmem:[#allocation7 + $0x98] sm:$0xff] %v125_v63 }
  0x23   :  { %157 = vst [vmem:[#allocation7 + $0xa0] sm:$0xff] %v126_v2 }
  0x24   :  { %158 = vst [vmem:[#allocation7 + $0xa8] sm:$0xff] %v127_v5 }
  0x25   :  { %159 = vst [vmem:[#allocation7 + $0xb0] sm:$0xff] %v128_v8 }
  0x26   :  { %160 = vst [vmem:[#allocation7 + $0xb8] sm:$0xff] %v129_v11 }
  0x27   :  { %161 = vst [vmem:[#allocation7 + $0xc0] sm:$0xff] %v130_v14 }
  0x28   :  { %162 = vst [vmem:[#allocation7 + $0xc8] sm:$0xff] %v131_v17 }
  0x29   :  { %163 = vst [vmem:[#allocation7 + $0xd0] sm:$0xff] %v132_v20 }
  0x2a   :  { %164 = vst [vmem:[#allocation7 + $0xd8] sm:$0xff] %v133_v23 }
  0x2b   :  { %165 = vst [vmem:[#allocation7 + $0xe0] sm:$0xff] %v134_v26 }
  0x2c   :  { %166 = vst [vmem:[#allocation7 + $0xe8] sm:$0xff] %v135_v27 }
  0x2d   :  { %167 = vst [vmem:[#allocation7 + $0xf0] sm:$0x1f] %v136_v28 }
  0x2e   :  { %180 = dma.vmem_to_hbm [thread:$0]  %s173_s1, 3968, %s175_s23, [#allocation4], %s272_s17, %s272_s17, %s273_s18  }
  0x2f   :  { %269 = dma.done.wait [#allocation4], 3968  }
  0x30   :  { %270 = vsyncadd [#allocation4], 4294963328 }
  0x31   :  { %185 = vsyncpa [#allocation3], 1 }
  0x32   :  { %186 = vsyncpa [#allocation6], 1 }
  0x33   :  { %187 = vsyncpa [#allocation4], 1 }

</bundles_post_ra>
